<compile_context>
chip_gen: v7x
topology: tpu7x:2x2x1
jax: 0.10.0
libtpu: 0.0.40
codegen_flags: <defaults>
</compile_context>

<pallas_src>
import functools

import jax
import jax.numpy as jnp
from jax.experimental import pallas as pl
from jax.experimental.pallas import tpu as pltpu

# Model dims implied by the reference forward.
IN_FEATURES = 32
HIDDEN = 32
N_OUTPUTS = 4

# Lane-dense padded feature dims for the *internal* (VMEM-only) tensors.
H_PAD = 128
O_PAD = 128

# Max batch-tile rows per grid step.  With unpadded (tm, 4) f32 output the
# pipelined I/O buffers at tm=8192 are ~2.3 MiB and the (tm,128) f32
# intermediates ~4 MiB each, comfortably inside a 32 MiB scoped-VMEM budget
# even on v7x (64 MiB physical).
TM_MAX = 8192


def _round_up(n, m):
    return ((n + m - 1) // m) * m


def mlp_kernel(x_ref, w1_ref, w2_ref, w3_ref, b_ref, o_ref):
    # One batch tile of the full 3-layer MLP.  Weights/biases are resident
    # across the grid; matmuls run on the MXU (bf16 in, f32 accumulate);
    # bias-add / ReLU in f32.  x arrives in f32 and is cast here (VPU slot).
    x = x_ref[...].astype(w1_ref.dtype)
    h = jnp.dot(x, w1_ref[...], preferred_element_type=jnp.float32) + b_ref[0:1, :]
    h = jnp.maximum(h, 0.0)
    h = jnp.dot(h.astype(w2_ref.dtype), w2_ref[...],
                preferred_element_type=jnp.float32) + b_ref[1:2, :]
    h = jnp.maximum(h, 0.0)
    y = jnp.dot(h.astype(w3_ref.dtype), w3_ref[...],
                preferred_element_type=jnp.float32) + b_ref[2:3, :]
    # Store only the true n_outputs lanes; padding never leaves vregs/VMEM.
    o_ref[...] = y[:, :N_OUTPUTS].astype(o_ref.dtype)


def prepare_params(params, compute_dtype=jnp.bfloat16):
    """One-time prep: transpose PyTorch-style (out, in) weights to (in, out),
    zero-pad internal feature dims to lane-dense 128, cast weights to the MXU
    compute dtype, and pack the three bias rows into a single (3, 128) array.
    Zero padding keeps the math identical to the unpadded module."""
    def pad_to(a, shape):
        pads = [(0, s - d) for d, s in zip(a.shape, shape)]
        return jnp.pad(a, pads)

    w1 = pad_to(params["w1"].T, (IN_FEATURES, H_PAD)).astype(compute_dtype)
    w2 = pad_to(params["w2"].T, (H_PAD, H_PAD)).astype(compute_dtype)
    w3 = pad_to(params["w3"].T, (H_PAD, O_PAD)).astype(compute_dtype)
    b_all = jnp.stack([
        pad_to(params["b1"], (H_PAD,)),
        pad_to(params["b2"], (H_PAD,)),
        pad_to(params["b3"], (O_PAD,)),
    ]).astype(jnp.float32)                     # (3, 128) resident constant
    return dict(w1=w1, w2=w2, w3=w3, b=b_all)


@jax.jit
def net_forward(x, prepped):
    """x: (B, IN_FEATURES) f32.  prepped: output of prepare_params()."""
    B = x.shape[0]

    # Batch tile: big tiles for DMA efficiency, but guarantee >= 2 grid steps
    # for B > 256 so the "parallel" axis can shard across v7x's two TCs.
    if B <= 256:
        tm = min(TM_MAX, B)
    else:
        tm = min(TM_MAX, _round_up(pl.cdiv(B, 2), 8))
    grid = (pl.cdiv(B, tm),)

    def resident(shape):                      # weights/biases: same block every step
        return pl.BlockSpec(shape, lambda i: (0, 0))

    out = pl.pallas_call(
        mlp_kernel,
        out_shape=jax.ShapeDtypeStruct((B, N_OUTPUTS), jnp.float32),
        grid=grid,
        in_specs=[
            pl.BlockSpec((tm, IN_FEATURES), lambda i: (i, 0)),   # x: tiled over batch (f32)
            resident((IN_FEATURES, H_PAD)),                      # w1
            resident((H_PAD, H_PAD)),                            # w2
            resident((H_PAD, O_PAD)),                            # w3
            resident((3, H_PAD)),                                # packed biases
        ],
        out_specs=pl.BlockSpec((tm, N_OUTPUTS), lambda i: (i, 0)),
        compiler_params=pltpu.CompilerParams(
            dimension_semantics=("parallel",),
            vmem_limit_bytes=32 * 1024 * 1024,
        ),
    )(x, prepped["w1"], prepped["w2"], prepped["w3"], prepped["b"])
    return out


def init_params(key, in_features=IN_FEATURES, hidden=HIDDEN, n_outputs=N_OUTPUTS):
    """Deterministic init mimicking nn.Linear default (uniform +/- 1/sqrt(fan_in))."""
    def linear_init(k, out_f, in_f):
        k_w, k_b = jax.random.split(k)
        bound = 1.0 / jnp.sqrt(in_f)
        w = jax.random.uniform(k_w, (out_f, in_f), jnp.float32, -bound, bound)
        b = jax.random.uniform(k_b, (out_f,), jnp.float32, -bound, bound)
        return w, b

    k1, k2, k3 = jax.random.split(key, 3)
    w1, b1 = linear_init(k1, hidden, in_features)
    w2, b2 = linear_init(k2, hidden, hidden)
    w3, b3 = linear_init(k3, n_outputs, hidden)
    return dict(w1=w1, b1=b1, w2=w2, b2=b2, w3=w3, b3=b3)


def net_reference(x, params):
    """Pure-JAX f32 reference (PyTorch semantics) for correctness checking."""
    h1 = jnp.maximum(x @ params["w1"].T + params["b1"], 0.0)
    h2 = jnp.maximum(h1 @ params["w2"].T + params["b2"], 0.0)
    return h2 @ params["w3"].T + params["b3"]


if __name__ == "__main__":
    key = jax.random.PRNGKey(0)
    k_x, k_p = jax.random.split(key)

    batch = 2
    x = jax.random.normal(k_x, (batch, IN_FEATURES), jnp.float32)
    params = init_params(k_p)
    prepped = prepare_params(params)

    y = net_forward(x, prepped)
    jax.block_until_ready(y)

    y_ref = net_reference(x, params)
    assert y.shape == (batch, N_OUTPUTS)
    # bf16 matmul inputs (f32 accumulation) -> loosened tolerance vs f32 reference.
    assert jnp.allclose(y, y_ref, atol=5e-2, rtol=5e-2), (y, y_ref)

    print("KERNEL_OK")
</pallas_src>

<mosaic_0001>
module attributes {stable_mosaic.version = 11 : i64} {
  func.func @mlp_kernel(%arg0: i32, %arg1: memref<2x32xf32, #tpu.memory_space<vmem>>, %arg2: memref<32x128xbf16, #tpu.memory_space<vmem>>, %arg3: memref<128x128xbf16, #tpu.memory_space<vmem>>, %arg4: memref<128x128xbf16, #tpu.memory_space<vmem>>, %arg5: memref<3x128xf32, #tpu.memory_space<vmem>>, %arg6: memref<2x4xf32, #tpu.memory_space<vmem>>) attributes {dimension_semantics = [#tpu.dimension_semantics<parallel>], iteration_bounds = array<i64: 1>, scalar_prefetch = 0 : i64, scratch_operands = 0 : i64, tpu.core_type = #tpu.core_type<tc>, window_params = [{transform_indices = @transform_0, window_bounds = array<i64: 2, 32>}, {pipeline_mode = #tpu.pipeline_mode<synchronous>, transform_indices = @transform_1, window_bounds = array<i64: 32, 128>}, {pipeline_mode = #tpu.pipeline_mode<synchronous>, transform_indices = @transform_2, window_bounds = array<i64: 128, 128>}, {pipeline_mode = #tpu.pipeline_mode<synchronous>, transform_indices = @transform_3, window_bounds = array<i64: 128, 128>}, {pipeline_mode = #tpu.pipeline_mode<synchronous>, transform_indices = @transform_4, window_bounds = array<i64: 3, 128>}, {transform_indices = @transform_5, window_bounds = array<i64: 2, 4>}]} {
    %c0 = arith.constant 0 : index
    %c0_0 = arith.constant 0 : index
    %0 = vector.load %arg1[%c0, %c0_0] : memref<2x32xf32, #tpu.memory_space<vmem>>, vector<2x32xf32>
    %1 = arith.truncf %0 : vector<2x32xf32> to vector<2x32xbf16>
    %c0_1 = arith.constant 0 : index
    %c0_2 = arith.constant 0 : index
    %2 = vector.load %arg2[%c0_1, %c0_2] : memref<32x128xbf16, #tpu.memory_space<vmem>>, vector<32x128xbf16>
    %cst = arith.constant dense<0.000000e+00> : vector<2x128xf32>
    %3 = tpu.matmul %1, %2, %cst {dimension_numbers = #tpu.dot_dimension_numbers<[1], [0], [0], [1], [0, 0, 1, 1], [], []>} : vector<2x32xbf16>, vector<32x128xbf16>, vector<2x128xf32> -> vector<2x128xf32>
    %c0_3 = arith.constant 0 : index
    %c0_4 = arith.constant 0 : index
    %4 = vector.load %arg5[%c0_3, %c0_4] : memref<3x128xf32, #tpu.memory_space<vmem>>, vector<1x128xf32>
    %5 = vector.broadcast %4 : vector<1x128xf32> to vector<2x128xf32>
    %6 = arith.addf %3, %5 : vector<2x128xf32>
    %cst_5 = arith.constant 0.000000e+00 : f32
    %7 = vector.broadcast %cst_5 : f32 to vector<2x128xf32>
    %8 = arith.maximumf %6, %7 : vector<2x128xf32>
    %9 = arith.truncf %8 : vector<2x128xf32> to vector<2x128xbf16>
    %c0_6 = arith.constant 0 : index
    %c0_7 = arith.constant 0 : index
    %10 = vector.load %arg3[%c0_6, %c0_7] : memref<128x128xbf16, #tpu.memory_space<vmem>>, vector<128x128xbf16>
    %cst_8 = arith.constant dense<0.000000e+00> : vector<2x128xf32>
    %11 = tpu.matmul %9, %10, %cst_8 {dimension_numbers = #tpu.dot_dimension_numbers<[1], [0], [0], [1], [0, 0, 1, 1], [], []>} : vector<2x128xbf16>, vector<128x128xbf16>, vector<2x128xf32> -> vector<2x128xf32>
    %c1 = arith.constant 1 : index
    %c0_9 = arith.constant 0 : index
    %12 = vector.load %arg5[%c1, %c0_9] : memref<3x128xf32, #tpu.memory_space<vmem>>, vector<1x128xf32>
    %13 = vector.broadcast %12 : vector<1x128xf32> to vector<2x128xf32>
    %14 = arith.addf %11, %13 : vector<2x128xf32>
    %cst_10 = arith.constant 0.000000e+00 : f32
    %15 = vector.broadcast %cst_10 : f32 to vector<2x128xf32>
    %16 = arith.maximumf %14, %15 : vector<2x128xf32>
    %17 = arith.truncf %16 : vector<2x128xf32> to vector<2x128xbf16>
    %c0_11 = arith.constant 0 : index
    %c0_12 = arith.constant 0 : index
    %18 = vector.load %arg4[%c0_11, %c0_12] : memref<128x128xbf16, #tpu.memory_space<vmem>>, vector<128x128xbf16>
    %cst_13 = arith.constant dense<0.000000e+00> : vector<2x128xf32>
    %19 = tpu.matmul %17, %18, %cst_13 {dimension_numbers = #tpu.dot_dimension_numbers<[1], [0], [0], [1], [0, 0, 1, 1], [], []>} : vector<2x128xbf16>, vector<128x128xbf16>, vector<2x128xf32> -> vector<2x128xf32>
    %c2 = arith.constant 2 : index
    %c0_14 = arith.constant 0 : index
    %20 = vector.load %arg5[%c2, %c0_14] : memref<3x128xf32, #tpu.memory_space<vmem>>, vector<1x128xf32>
    %21 = vector.broadcast %20 : vector<1x128xf32> to vector<2x128xf32>
    %22 = arith.addf %19, %21 : vector<2x128xf32>
    %23 = vector.extract_strided_slice %22 {offsets = [0, 0], sizes = [2, 4], strides = [1, 1]} : vector<2x128xf32> to vector<2x4xf32>
    %c0_15 = arith.constant 0 : index
    %c0_16 = arith.constant 0 : index
    %24 = vector.load %arg6[%c0_15, %c0_16] : memref<2x4xf32, #tpu.memory_space<vmem>>, vector<2x4xf32>
    tpu.vector_store %arg6[%c0_15, %c0_16], %23 {strides = array<i32>} : memref<2x4xf32, #tpu.memory_space<vmem>>, vector<2x4xf32>,
    return
  }
  func.func @transform_0(%arg0: i32) -> (i32, i32) {
    %c0_i32 = arith.constant 0 : i32
    %c0_i32_0 = arith.constant 0 : i32
    return %arg0, %c0_i32 : i32, i32
  }
  func.func @transform_1(%arg0: i32) -> (i32, i32) {
    %c0_i32 = arith.constant 0 : i32
    %c0_i32_0 = arith.constant 0 : i32
    %c0_i32_1 = arith.constant 0 : i32
    return %c0_i32, %c0_i32_0 : i32, i32
  }
  func.func @transform_2(%arg0: i32) -> (i32, i32) {
    %c0_i32 = arith.constant 0 : i32
    %c0_i32_0 = arith.constant 0 : i32
    %c0_i32_1 = arith.constant 0 : i32
    return %c0_i32, %c0_i32_0 : i32, i32
  }
  func.func @transform_3(%arg0: i32) -> (i32, i32) {
    %c0_i32 = arith.constant 0 : i32
    %c0_i32_0 = arith.constant 0 : i32
    %c0_i32_1 = arith.constant 0 : i32
    return %c0_i32, %c0_i32_0 : i32, i32
  }
  func.func @transform_4(%arg0: i32) -> (i32, i32) {
    %c0_i32 = arith.constant 0 : i32
    %c0_i32_0 = arith.constant 0 : i32
    %c0_i32_1 = arith.constant 0 : i32
    return %c0_i32, %c0_i32_0 : i32, i32
  }
  func.func @transform_5(%arg0: i32) -> (i32, i32) {
    %c0_i32 = arith.constant 0 : i32
    %c0_i32_0 = arith.constant 0 : i32
    return %arg0, %c0_i32 : i32, i32
  }
}

</mosaic_0001>

<bundles_post_ra>
// kernel: net_forward.1
= control target key start
LH: loop header
LB: loop body
LE: loop exit
PB: predicated region body
PF: predicated region fallthrough
CT: control target
= control target key end

     0   :  { %10 = vsyncpa [#allocation3], 0  ;;  %s798_s0 = inlined_call_operand.hbm [shape: f32[2,32], index: 0, kind: input, shape index: {}]   ;;  %s799_s1 = inlined_call_operand.hbm [shape: bf16[32,128], index: 1, kind: input, shape index: {}]   ;;  %s800_s2 = inlined_call_operand.hbm [shape: bf16[128,128], index: 2, kind: input, shape index: {}]   ;;  %s801_s3 = inlined_call_operand.hbm [shape: bf16[128,128], index: 3, kind: input, shape index: {}]   ;;  %s802_s4 = inlined_call_operand.hbm [shape: f32[3,128], index: 4, kind: input, shape index: {}]   ;;  %s803_s5 = inlined_call_operand.hbm [shape: f32[2,4], index: 5, kind: output, shape index: {}]  }
   0x1   :  { %11 = vsyncpa [#allocation6], 0 }
   0x2   :  { %12 = vsyncpa [#allocation9], 0 }
   0x3   :  { %13 = vsyncpa [#allocation4], 0  ;;  %s653_s18 = smov [#allocation5]   ;;  %s513_s22 = scalar_lea.hbm %s799_s1, 256 }
   0x4   :  { %s29_s19 = sshll.u32 %s653_s18, 4  ;;  %p514_p0 = scmp.ne.s32.totalorder %s799_s1, %s513_s22  ;;  %s30_s19 = int_to_ptr.vmem [resolvable:$true] %s29_s19 }
   0x5   :  { %p517_p1 = scmp.lt.u32.totalorder %s513_s22, %s799_s1 }
   0x7   :  { %p519_p2 = pnand %p517_p1, %p514_p0 }
   0x9   :  { %522 = shalt.err (!%p519_p2)
}
   0xa   :  { %s523_s27 = scalar_lea.vmem %s30_s19, 256  ;;  %p528_p4 = scmp.lt.s32.totalorder %s30_s19, %s30_s19 }
   0xb   :  { %p524_p3 = scmp.ne.s32.totalorder %s30_s19, %s523_s27  ;;  %p529_p5 = scmp.lt.s32.totalorder %s523_s27, %s523_s27 }
   0xd   :  { %p530_p6 = por %p529_p5, %p528_p4 }
   0xf   :  { %p531_p7 = pnand %p530_p6, %p524_p3 }
  0x11   :  { %534 = shalt.err (!%p531_p7)
}
  0x12   :  { %s654_s28 = smov 64   ;;  %s655_s29 = smov 4  }
  0x13   :  { %35 = dma.hbm_to_vmem [thread:$0]  %s799_s1, 256, %s30_s19, [#allocation6], %s654_s28, %s654_s28, %s655_s29  }
  0x14   :  { %s656_s7 = smov [#allocation8]   ;;  %s657_s9 = smov [#allocation2]  }
  0x15   :  { %s53_s8 = sshll.u32 %s656_s7, 4  ;;  %s20_s10 = sshll.u32 %s657_s9, 4  ;;  %s54_s8 = int_to_ptr.vmem [resolvable:$true] %s53_s8  ;;  %s21_s10 = int_to_ptr.vmem [resolvable:$true] %s20_s10 }
  0x16   :  { %s535_s13 = scalar_lea.hbm %s801_s3, 1024 }
  0x17   :  { %p536_p8 = scmp.ne.s32.totalorder %s801_s3, %s535_s13  ;;  %p539_p9 = scmp.lt.u32.totalorder %s535_s13, %s801_s3 }
  0x19   :  { %p541_p10 = pnand %p539_p9, %p536_p8 }
  0x1b   :  { %544 = shalt.err (!%p541_p10)
}
  0x1c   :  { %s545_s1 = scalar_lea.vmem %s54_s8, 1024  ;;  %p550_p12 = scmp.lt.s32.totalorder %s54_s8, %s54_s8 }
  0x1d   :  { %p546_p11 = scmp.ne.s32.totalorder %s54_s8, %s545_s1  ;;  %p551_p13 = scmp.lt.s32.totalorder %s545_s1, %s545_s1 }
  0x1f   :  { %p552_p0 = por %p551_p13, %p550_p12 }
  0x21   :  { %p553_p1 = pnand %p552_p0, %p546_p11 }
  0x23   :  { %556 = shalt.err (!%p553_p1)
}
  0x24   :  { %59 = dma.hbm_to_vmem [thread:$0]  %s801_s3, 1024, %s54_s8, [#allocation9], %s654_s28, %s654_s28, %s655_s29  }
  0x25   :  { %s557_s22 = scalar_lea.hbm %s798_s0, 32 }
  0x26   :  { %p558_p2 = scmp.ne.s32.totalorder %s798_s0, %s557_s22  ;;  %p561_p3 = scmp.lt.u32.totalorder %s557_s22, %s798_s0 }
  0x28   :  { %p563_p4 = pnand %p561_p3, %p558_p2 }
  0x2a   :  { %566 = shalt.err (!%p563_p4)
}
  0x2b   :  { %s567_s27 = scalar_lea.vmem %s21_s10, 32  ;;  %p572_p6 = scmp.lt.s32.totalorder %s21_s10, %s21_s10 }
  0x2c   :  { %p568_p5 = scmp.ne.s32.totalorder %s21_s10, %s567_s27  ;;  %p573_p7 = scmp.lt.s32.totalorder %s567_s27, %s567_s27 }
  0x2e   :  { %p574_p8 = por %p573_p7, %p572_p6 }
  0x30   :  { %p575_p9 = pnand %p574_p8, %p568_p5 }
  0x32   :  { %578 = shalt.err (!%p575_p9)
}
  0x33   :  { %23 = dma.hbm_to_vmem [thread:$0]  %s798_s0, 32, %s21_s10, [#allocation3]  }
  0x34   :  { %s658_s6 = smov [#allocation7]   ;;  %s659_s8 = smov [#allocation10]  }
  0x35   :  { %s41_s7 = sshll.u32 %s658_s6, 4  ;;  %s66_s9 = sshll.u32 %s659_s8, 4  ;;  %s42_s7 = int_to_ptr.vmem [resolvable:$true] %s41_s7  ;;  %s67_s9 = int_to_ptr.vmem [resolvable:$true] %s66_s9 }
  0x36   :  { %s579_s13 = scalar_lea.hbm %s800_s2, 1024 }
  0x37   :  { %p580_p10 = scmp.ne.s32.totalorder %s800_s2, %s579_s13  ;;  %p583_p11 = scmp.lt.u32.totalorder %s579_s13, %s800_s2 }
  0x39   :  { %p585_p12 = pnand %p583_p11, %p580_p10 }
  0x3b   :  { %588 = shalt.err (!%p585_p12)
}
  0x3c   :  { %s589_s0 = scalar_lea.vmem %s42_s7, 1024  ;;  %p594_p0 = scmp.lt.s32.totalorder %s42_s7, %s42_s7 }
  0x3d   :  { %p590_p13 = scmp.ne.s32.totalorder %s42_s7, %s589_s0  ;;  %p595_p1 = scmp.lt.s32.totalorder %s589_s0, %s589_s0 }
  0x3f   :  { %p596_p2 = por %p595_p1, %p594_p0 }
  0x41   :  { %p597_p3 = pnand %p596_p2, %p590_p13 }
  0x43   :  { %600 = shalt.err (!%p597_p3)
}
  0x44   :  { %47 = dma.hbm_to_vmem [thread:$0]  %s800_s2, 1024, %s42_s7, [#allocation6], %s654_s28, %s654_s28, %s655_s29  }
  0x45   :  { %s601_s20 = scalar_lea.hbm %s802_s4, 64 }
  0x46   :  { %p602_p4 = scmp.ne.s32.totalorder %s802_s4, %s601_s20  ;;  %p605_p5 = scmp.lt.u32.totalorder %s601_s20, %s802_s4 }
  0x48   :  { %p607_p6 = pnand %p605_p5, %p602_p4 }
  0x4a   :  { %610 = shalt.err (!%p607_p6)
}
  0x4b   :  { %s611_s25 = scalar_lea.vmem %s67_s9, 64  ;;  %p616_p8 = scmp.lt.s32.totalorder %s67_s9, %s67_s9 }
  0x4c   :  { %p612_p7 = scmp.ne.s32.totalorder %s67_s9, %s611_s25  ;;  %p617_p9 = scmp.lt.s32.totalorder %s611_s25, %s611_s25 }
  0x4e   :  { %p618_p10 = por %p617_p9, %p616_p8 }
  0x50   :  { %p619_p11 = pnand %p618_p10, %p612_p7 }
  0x52   :  { %622 = shalt.err (!%p619_p11)
}
  0x53   :  { %69 = dma.hbm_to_vmem [thread:$0]  %s802_s4, 64, %s67_s9, [#allocation9]  }
  0x54   :  { %645 = dma.done.wait [#allocation3], 32  }
  0x55   :  { %646 = vsyncadd [#allocation3], 4294967264 }
  0x56   :  { %647 = dma.done.wait [#allocation6], 1280  }
  0x57   :  { %648 = vsyncadd [#allocation6], 4294966016 }
  0x58   :  { %649 = dma.done.wait [#allocation9], 1088  }
  0x59   :  { %650 = vsyncadd [#allocation9], 4294966208  ;;  %v660_v0 = vmov 0.0   ;;  %vm661_vm0 = vmmov 0   ;;  %v495_v1 = vld [vmem:[#allocation5] sm:$0xff]   ;;  %v496_v2 = vld [vmem:[#allocation5 + $0x8] sm:$0xff]  }
  0x5a   :  { %437 = vmatprep.subr.bf16.mxu0 %v660_v0  ;;  %441 = vmatprep.mubr.msk.bf16.mxu0 %vm661_vm0, %v660_v0  ;;  %v86_v3 = vld [vmem:[#allocation2] sm:$0x3]  ;;  %v497_v4 = vld [vmem:[#allocation7] sm:$0xff]   ;;  %vm109_vm1 = vcmask 261120   ;;  %v499_v7 = vld [vmem:[#allocation7 + $0x10] sm:$0xff]   ;;  %s662_s4 = smov [#allocation11]  }
  0x5b   :  { %445 = vmatprep.subr.bf16.mxu1 %v660_v0  ;;  %461 = vmatprep.mubr.msk.bf16.mxu1 %vm661_vm0, %v660_v0  ;;  %v87_v5 = vpack.c.bf16 %v86_v3, %v86_v3  ;;  %v498_v6 = vld [vmem:[#allocation7 + $0x8] sm:$0xff]   ;;  %v500_v8 = vld [vmem:[#allocation7 + $0x18] sm:$0xff]   ;;  %v501_v9 = vld [vmem:[#allocation7 + $0x20] sm:$0xff]   ;;  %s383_s29 = sshll.u32 %s662_s4, 4  ;;  %vm375_vm2 = vcmask 25600   ;;  %s384_s29 = int_to_ptr.vmem [resolvable:$true] %s383_s29 }
  0x5c   :  { %438 = vmatpush3.bf16.msra.mxu0 %v495_v1  ;;  %446 = vmatpush3.bf16.msra.mxu1 %v497_v4  ;;  %v502_v10 = vld [vmem:[#allocation7 + $0x28] sm:$0xff]   ;;  %v503_v11 = vld [vmem:[#allocation7 + $0x30] sm:$0xff]   ;;  %v504_v12 = vld [vmem:[#allocation7 + $0x38] sm:$0xff]   ;;  %s623_s26 = scalar_lea.vmem %s384_s29, 32  ;;  %p628_p13 = scmp.lt.s32.totalorder %s384_s29, %s384_s29 }
  0x5d   :  { %439 = vmatprep.subr.bf16.mxu0 %v660_v0  ;;  %447 = vmatprep.subr.bf16.mxu1 %v660_v0  ;;  %v505_v13 = vld [vmem:[#allocation8] sm:$0xff]   ;;  %v506_v14 = vld [vmem:[#allocation8 + $0x8] sm:$0xff]   ;;  %v507_v15 = vld [vmem:[#allocation8 + $0x10] sm:$0xff]   ;;  %p624_p12 = scmp.ne.s32.totalorder %s384_s29, %s623_s26  ;;  %p629_p0 = scmp.lt.s32.totalorder %s623_s26, %s623_s26 }
  0x5e   :  { %v508_v16 = vld [vmem:[#allocation8 + $0x18] sm:$0xff]   ;;  %v509_v17 = vld [vmem:[#allocation8 + $0x20] sm:$0xff]   ;;  %v510_v18 = vld [vmem:[#allocation8 + $0x28] sm:$0xff]  }
  0x5f   :  { %v394_v19 = vld [vmem:[#allocation10] ss:$0 sm:$0xff]  ;;  %v511_v27 = vld [vmem:[#allocation8 + $0x30] sm:$0xff]   ;;  %v512_v28 = vld [vmem:[#allocation8 + $0x38] sm:$0xff]   ;;  %p630_p1 = por %p629_p0, %p628_p13 }
  0x60   :  { %440 = vmatpush3.bf16.msra.mxu0 %v496_v2  ;;  %448 = vmatpush3.bf16.msra.mxu1 %v498_v6  ;;  %v398_v29 = vld [vmem:[#allocation10 + $0x1] ss:$0 sm:$0xff]  ;;  %v407_v37 = vld [vmem:[#allocation10 + $0x2] ss:$0 sm:$0xff] }
  0x61   :  { %465 = vmatprep.subr.bf16.mxu0 %v660_v0  ;;  %449 = vmatprep.subr.bf16.mxu1 %v660_v0  ;;  %p631_p2 = pnand %p630_p1, %p624_p12 }
  0x63   :  { %442 = vmatmul.mubr.msk.bf16.vlgmr.msra.gmra.mrb[0].mxu0 %vm109_vm1, %v87_v5 }
  0x64   :  { %481 = vmatprep.mubr.msk.bf16.mxu0 %vm661_vm0, %v660_v0  ;;  %450 = vmatpush3.bf16.msra.mxu1 %v499_v7 }
  0x65   :  { %451 = vmatprep.subr.bf16.mxu1 %v660_v0  ;;  %466 = vmatpush3.bf16.msra.mxu0 %v505_v13 }
  0x66   :  { %467 = vmatprep.subr.bf16.mxu0 %v660_v0 }
  0x68   :  { %452 = vmatpush3.bf16.msra.mxu1 %v500_v8 }
  0x69   :  { %453 = vmatprep.subr.bf16.mxu1 %v660_v0  ;;  %468 = vmatpush3.bf16.msra.mxu0 %v506_v14 }
  0x6a   :  { %469 = vmatprep.subr.bf16.mxu0 %v660_v0 }
  0x6c   :  { %454 = vmatpush3.bf16.msra.mxu1 %v501_v9 }
  0x6d   :  { %455 = vmatprep.subr.bf16.mxu1 %v660_v0  ;;  %470 = vmatpush3.bf16.msra.mxu0 %v507_v15 }
  0x6e   :  { %471 = vmatprep.subr.bf16.mxu0 %v660_v0 }
  0x70   :  { %456 = vmatpush3.bf16.msra.mxu1 %v502_v10 }
  0x71   :  { %457 = vmatprep.subr.bf16.mxu1 %v660_v0  ;;  %472 = vmatpush3.bf16.msra.mxu0 %v508_v16 }
  0x72   :  { %473 = vmatprep.subr.bf16.mxu0 %v660_v0 }
  0x74   :  { %458 = vmatpush3.bf16.msra.mxu1 %v503_v11 }
  0x75   :  { %459 = vmatprep.subr.bf16.mxu1 %v660_v0  ;;  %474 = vmatpush3.bf16.msra.mxu0 %v509_v17 }
  0x76   :  { %475 = vmatprep.subr.bf16.mxu0 %v660_v0 }
  0x78   :  { %460 = vmatpush3.bf16.msra.mxu1 %v504_v12 }
  0x79   :  { %476 = vmatpush3.bf16.msra.mxu0 %v510_v18 }
  0x7a   :  { %477 = vmatprep.subr.bf16.mxu0 %v660_v0 }
  0x7d   :  { %478 = vmatpush3.bf16.msra.mxu0 %v511_v27 }
  0x7e   :  { %479 = vmatprep.subr.bf16.mxu0 %v660_v0 }
  0x81   :  { %480 = vmatpush3.bf16.msra.mxu0 %v512_v28 }
 0x136   :  { %v147_v20 = vpop.f32.mrb[0].mxu0 }
 0x137   :  { %v148_v21 = vadd.f32 %v394_v19, %v147_v20  ;;  %v443_v22 = vpop.f32.mrb[1].mxu0 }
 0x138   :  { %v150_v23 = vpop.f32.mrb[2].mxu0 }
 0x139   :  { %v153_v24 = vmax.f32 %v148_v21, 0.0  ;;  %v444_v25 = vpop.f32.mrb[3].mxu0 }
 0x13b   :  { %v154_v26 = vpack.c.bf16 %v153_v24, %v153_v24 }
 0x13d   :  { %462 = vmatmul.mubr.bf16.vlgmr.msra.gmra.mrb[0].mxu1 %v154_v26 }
 0x210   :  { %v258_v30 = vpop.f32.mrb[0].mxu1 }
 0x211   :  { %v259_v31 = vadd.f32 %v398_v29, %v258_v30  ;;  %v463_v32 = vpop.f32.mrb[1].mxu1 }
 0x212   :  { %v261_v33 = vpop.f32.mrb[2].mxu1 }
 0x213   :  { %v264_v34 = vmax.f32 %v259_v31, 0.0  ;;  %v464_v35 = vpop.f32.mrb[3].mxu1 }
 0x215   :  { %v265_v36 = vpack.c.bf16 %v264_v34, %v264_v34 }
 0x217   :  { %482 = vmatmul.mubr.bf16.vlgmr.msra.gmra.mrb[4].mxu0 %v265_v36 }
 0x2ea   :  { %v369_v38 = vpop.f32.mrb[4].mxu0 }
 0x2eb   :  { %v370_v39 = vadd.f32 %v407_v37, %v369_v38  ;;  %v483_v40 = vpop.f32.mrb[5].mxu0 }
 0x2ec   :  { %v372_v41 = vpop.f32.mrb[6].mxu0 }
 0x2ed   :  { %v484_v42 = vpop.f32.mrb[7].mxu0  ;;  %376 = vst.msk [vmem:[#allocation11] sm:$0x3] %vm375_vm2, %v370_v39 }
 0x2ee   :  { %634 = shalt.err (!%p631_p2)
}
 0x2ef   :  { %s635_s30 = scalar_lea.hbm %s803_s5, 32 }
 0x2f0   :  { %p636_p3 = scmp.ne.s32.totalorder %s803_s5, %s635_s30  ;;  %p639_p4 = scmp.lt.u32.totalorder %s635_s30, %s803_s5 }
 0x2f2   :  { %p641_p5 = pnand %p639_p4, %p636_p3 }
 0x2f4   :  { %644 = shalt.err (!%p641_p5)
}
 0x2f5   :  { %386 = dma.vmem_to_hbm [thread:$0]  %s384_s29, 32, %s803_s5, [#allocation4]  }
 0x2f6   :  { %651 = dma.done.wait [#allocation4], 32  }
 0x2f7   :  { %652 = vsyncadd [#allocation4], 4294967264 }
 0x2f8   :  { %390 = vsyncpa [#allocation3], 1 }
 0x2f9   :  { %391 = vsyncpa [#allocation6], 1 }
 0x2fa   :  { %392 = vsyncpa [#allocation9], 1 }
 0x2fb   :  { %393 = vsyncpa [#allocation4], 1 }

</bundles_post_ra>
